<compile_context>
chip_gen: v7x
topology: tpu7x:2x2x1
jax: 0.10.0
libtpu: 0.0.40
codegen_flags: <defaults>
</compile_context>

<pallas_src>
import jax
import jax.numpy as jnp
from jax.experimental import pallas as pl
from jax.experimental.pallas import tpu as pltpu


def _round_up(n, m):
    return ((n + m - 1) // m) * m


def quad_predictor_kernel(x_ref,
                          w1_ref, b1_ref,
                          w2_ref, b2_ref,
                          w3_ref, b3_ref,
                          w4_ref, b4_ref,
                          o_ref):
    # Batch on lanes: x (4, tm), activations (64, tm), output (12, tm).
    x = x_ref[...].astype(jnp.bfloat16)                                  # (4, tm)

    # ---- Layer 1: W1^T (64,4) @ x (4,tm) — single MXU dot, full 128-lane-dense N ----
    h = jnp.dot(w1_ref[...], x, preferred_element_type=jnp.float32) + b1_ref[...]
    h = jnp.maximum(h, 0.0)                                              # (64, tm) f32

    # ---- Layers 2-3: bf16 MXU operands, f32 accumulation, f32 bias/ReLU ----
    h = jnp.dot(w2_ref[...], h.astype(jnp.bfloat16),
                preferred_element_type=jnp.float32) + b2_ref[...]
    h = jnp.maximum(h, 0.0)

    h = jnp.dot(w3_ref[...], h.astype(jnp.bfloat16),
                preferred_element_type=jnp.float32) + b3_ref[...]
    h = jnp.maximum(h, 0.0)

    # ---- Layer 4: (12,64) @ (64,tm); store is unmasked (tm % 128 == 0 on the lane axis) ----
    out = jnp.dot(w4_ref[...], h.astype(jnp.bfloat16),
                  preferred_element_type=jnp.float32) + b4_ref[...]
    o_ref[...] = out.astype(o_ref.dtype)


def quad_predictor_forward(x, params, *, tile_m=4096):
    """x: (B, 4) float32; params: dict of (in,out) f32 weights and (1,out) f32 biases.

    Returns (B, 12) float32, matching the PyTorch module's forward.
    """
    B = x.shape[0]

    # Batch tile on the lane axis -> must be a multiple of 128.  Cap at ceil(B/2) (rounded up)
    # so the grid keeps >=2 steps when B is large enough (v7x dual-TC sharding; no-op on
    # v5e/v6e), and at tile_m so per-tile VMEM stays small.
    half = -(-B // 2)
    tm = max(128, min(_round_up(tile_m, 128), _round_up(half, 128)))
    b_pad = _round_up(B, tm)

    # One transpose on each side of the kernel keeps the caller-facing layout (B,4)/(B,12)
    # while the kernel sees lane-dense (features x batch) tiles.
    x_t = x.astype(jnp.float32).T                        # (4, B)
    if b_pad != B:
        x_t = jnp.pad(x_t, ((0, 0), (0, b_pad - B)))
    grid = (b_pad // tm,)

    # Pre-transpose weights to (out, in) and cast to bf16 once; biases become (out, 1) f32.
    w1 = params["w1"].T.astype(jnp.bfloat16)             # (64, 4)
    w2 = params["w2"].T.astype(jnp.bfloat16)             # (64, 64)
    w3 = params["w3"].T.astype(jnp.bfloat16)             # (64, 64)
    w4 = params["w4"].T.astype(jnp.bfloat16)             # (12, 64)
    b1 = params["b1"].reshape(-1, 1).astype(jnp.float32)  # (64, 1)
    b2 = params["b2"].reshape(-1, 1).astype(jnp.float32)  # (64, 1)
    b3 = params["b3"].reshape(-1, 1).astype(jnp.float32)  # (64, 1)
    b4 = params["b4"].reshape(-1, 1).astype(jnp.float32)  # (12, 1)

    def resident(a):  # full array, same block every grid step -> stays VMEM-resident
        return pl.BlockSpec(a.shape, lambda i: (0, 0))

    out_t = pl.pallas_call(
        quad_predictor_kernel,
        out_shape=jax.ShapeDtypeStruct((12, b_pad), jnp.float32),
        grid=grid,
        in_specs=[pl.BlockSpec((4, tm), lambda i: (0, i)),
                  resident(w1), resident(b1),
                  resident(w2), resident(b2),
                  resident(w3), resident(b3),
                  resident(w4), resident(b4)],
        out_specs=pl.BlockSpec((12, tm), lambda i: (0, i)),
        compiler_params=pltpu.CompilerParams(
            dimension_semantics=("parallel",)),
    )(x_t, w1, b1, w2, b2, w3, b3, w4, b4)

    out_t = out_t[:, :B] if b_pad != B else out_t
    return out_t.T                                       # (B, 12)


def init_params(key):
    """Deterministic init mirroring nn.Linear default (uniform +/- 1/sqrt(fan_in))."""
    dims = [(4, 64), (64, 64), (64, 64), (64, 12)]
    params = {}
    keys = jax.random.split(key, 2 * len(dims))
    for i, (fan_in, fan_out) in enumerate(dims):
        bound = 1.0 / jnp.sqrt(float(fan_in))
        w = jax.random.uniform(keys[2 * i], (fan_in, fan_out),
                               minval=-bound, maxval=bound, dtype=jnp.float32)
        b = jax.random.uniform(keys[2 * i + 1], (1, fan_out),
                               minval=-bound, maxval=bound, dtype=jnp.float32)
        params[f"w{i + 1}"] = w
        params[f"b{i + 1}"] = b
    return params


def reference_forward(x, params):
    h = x
    for i in range(1, 4):
        h = jnp.maximum(h @ params[f"w{i}"] + params[f"b{i}"], 0.0)
    return h @ params["w4"] + params["b4"]


if __name__ == "__main__":
    key = jax.random.PRNGKey(0)
    pkey, xkey, xkey2 = jax.random.split(key, 3)
    params = init_params(pkey)

    # Small single-tile case (B=8 -> one padded 128-wide lane tile).
    batch = 8
    x = jax.random.normal(xkey, (batch, 4), dtype=jnp.float32)
    out = jax.block_until_ready(quad_predictor_forward(x, params))
    ref = reference_forward(x, params)
    assert out.shape == (batch, 12)
    # bf16 MXU operands -> loosen tolerance vs the f32 reference.
    assert jnp.allclose(out, ref, atol=5e-2, rtol=5e-2), "mismatch vs reference (batch=8)"

    # Multi-tile + padded tail case (exercises the batch grid: 3 grid steps at tm=128).
    batch2 = 300
    x2 = jax.random.normal(xkey2, (batch2, 4), dtype=jnp.float32)
    out2 = jax.block_until_ready(quad_predictor_forward(x2, params, tile_m=128))
    ref2 = reference_forward(x2, params)
    assert out2.shape == (batch2, 12)
    assert jnp.allclose(out2, ref2, atol=5e-2, rtol=5e-2), "mismatch vs reference (batch=300)"

    print("KERNEL_OK")
</pallas_src>

<mosaic_0001>
module attributes {stable_mosaic.version = 11 : i64} {
  func.func @quad_predictor_kernel(%arg0: i32, %arg1: memref<4x128xf32, #tpu.memory_space<vmem>>, %arg2: memref<64x4xbf16, #tpu.memory_space<vmem>>, %arg3: memref<64x1xf32, #tpu.memory_space<vmem>>, %arg4: memref<64x64xbf16, #tpu.memory_space<vmem>>, %arg5: memref<64x1xf32, #tpu.memory_space<vmem>>, %arg6: memref<64x64xbf16, #tpu.memory_space<vmem>>, %arg7: memref<64x1xf32, #tpu.memory_space<vmem>>, %arg8: memref<12x64xbf16, #tpu.memory_space<vmem>>, %arg9: memref<12x1xf32, #tpu.memory_space<vmem>>, %arg10: memref<12x128xf32, #tpu.memory_space<vmem>>) attributes {dimension_semantics = [#tpu.dimension_semantics<parallel>], iteration_bounds = array<i64: 1>, scalar_prefetch = 0 : i64, scratch_operands = 0 : i64, tpu.core_type = #tpu.core_type<tc>, window_params = [{transform_indices = @transform_0, window_bounds = array<i64: 4, 128>}, {pipeline_mode = #tpu.pipeline_mode<synchronous>, transform_indices = @transform_1, window_bounds = array<i64: 64, 4>}, {pipeline_mode = #tpu.pipeline_mode<synchronous>, transform_indices = @transform_2, window_bounds = array<i64: 64, 1>}, {pipeline_mode = #tpu.pipeline_mode<synchronous>, transform_indices = @transform_3, window_bounds = array<i64: 64, 64>}, {pipeline_mode = #tpu.pipeline_mode<synchronous>, transform_indices = @transform_4, window_bounds = array<i64: 64, 1>}, {pipeline_mode = #tpu.pipeline_mode<synchronous>, transform_indices = @transform_5, window_bounds = array<i64: 64, 64>}, {pipeline_mode = #tpu.pipeline_mode<synchronous>, transform_indices = @transform_6, window_bounds = array<i64: 64, 1>}, {pipeline_mode = #tpu.pipeline_mode<synchronous>, transform_indices = @transform_7, window_bounds = array<i64: 12, 64>}, {pipeline_mode = #tpu.pipeline_mode<synchronous>, transform_indices = @transform_8, window_bounds = array<i64: 12, 1>}, {transform_indices = @transform_9, window_bounds = array<i64: 12, 128>}]} {
    %c0 = arith.constant 0 : index
    %c0_0 = arith.constant 0 : index
    %0 = vector.load %arg1[%c0, %c0_0] : memref<4x128xf32, #tpu.memory_space<vmem>>, vector<4x128xf32>
    %1 = arith.truncf %0 : vector<4x128xf32> to vector<4x128xbf16>
    %c0_1 = arith.constant 0 : index
    %c0_2 = arith.constant 0 : index
    %2 = vector.load %arg2[%c0_1, %c0_2] : memref<64x4xbf16, #tpu.memory_space<vmem>>, vector<64x4xbf16>
    %cst = arith.constant dense<0.000000e+00> : vector<64x128xf32>
    %3 = tpu.matmul %2, %1, %cst {dimension_numbers = #tpu.dot_dimension_numbers<[1], [0], [0], [1], [0, 0, 1, 1], [], []>} : vector<64x4xbf16>, vector<4x128xbf16>, vector<64x128xf32> -> vector<64x128xf32>
    %c0_3 = arith.constant 0 : index
    %c0_4 = arith.constant 0 : index
    %4 = vector.load %arg3[%c0_3, %c0_4] : memref<64x1xf32, #tpu.memory_space<vmem>>, vector<64x1xf32>
    %5 = vector.broadcast %4 : vector<64x1xf32> to vector<64x128xf32>
    %6 = arith.addf %3, %5 : vector<64x128xf32>
    %cst_5 = arith.constant 0.000000e+00 : f32
    %7 = vector.broadcast %cst_5 : f32 to vector<64x128xf32>
    %8 = arith.maximumf %6, %7 : vector<64x128xf32>
    %c0_6 = arith.constant 0 : index
    %c0_7 = arith.constant 0 : index
    %9 = vector.load %arg4[%c0_6, %c0_7] : memref<64x64xbf16, #tpu.memory_space<vmem>>, vector<64x64xbf16>
    %10 = arith.truncf %8 : vector<64x128xf32> to vector<64x128xbf16>
    %cst_8 = arith.constant dense<0.000000e+00> : vector<64x128xf32>
    %11 = tpu.matmul %9, %10, %cst_8 {dimension_numbers = #tpu.dot_dimension_numbers<[1], [0], [0], [1], [0, 0, 1, 1], [], []>} : vector<64x64xbf16>, vector<64x128xbf16>, vector<64x128xf32> -> vector<64x128xf32>
    %c0_9 = arith.constant 0 : index
    %c0_10 = arith.constant 0 : index
    %12 = vector.load %arg5[%c0_9, %c0_10] : memref<64x1xf32, #tpu.memory_space<vmem>>, vector<64x1xf32>
    %13 = vector.broadcast %12 : vector<64x1xf32> to vector<64x128xf32>
    %14 = arith.addf %11, %13 : vector<64x128xf32>
    %cst_11 = arith.constant 0.000000e+00 : f32
    %15 = vector.broadcast %cst_11 : f32 to vector<64x128xf32>
    %16 = arith.maximumf %14, %15 : vector<64x128xf32>
    %c0_12 = arith.constant 0 : index
    %c0_13 = arith.constant 0 : index
    %17 = vector.load %arg6[%c0_12, %c0_13] : memref<64x64xbf16, #tpu.memory_space<vmem>>, vector<64x64xbf16>
    %18 = arith.truncf %16 : vector<64x128xf32> to vector<64x128xbf16>
    %cst_14 = arith.constant dense<0.000000e+00> : vector<64x128xf32>
    %19 = tpu.matmul %17, %18, %cst_14 {dimension_numbers = #tpu.dot_dimension_numbers<[1], [0], [0], [1], [0, 0, 1, 1], [], []>} : vector<64x64xbf16>, vector<64x128xbf16>, vector<64x128xf32> -> vector<64x128xf32>
    %c0_15 = arith.constant 0 : index
    %c0_16 = arith.constant 0 : index
    %20 = vector.load %arg7[%c0_15, %c0_16] : memref<64x1xf32, #tpu.memory_space<vmem>>, vector<64x1xf32>
    %21 = vector.broadcast %20 : vector<64x1xf32> to vector<64x128xf32>
    %22 = arith.addf %19, %21 : vector<64x128xf32>
    %cst_17 = arith.constant 0.000000e+00 : f32
    %23 = vector.broadcast %cst_17 : f32 to vector<64x128xf32>
    %24 = arith.maximumf %22, %23 : vector<64x128xf32>
    %c0_18 = arith.constant 0 : index
    %c0_19 = arith.constant 0 : index
    %25 = vector.load %arg8[%c0_18, %c0_19] : memref<12x64xbf16, #tpu.memory_space<vmem>>, vector<12x64xbf16>
    %26 = arith.truncf %24 : vector<64x128xf32> to vector<64x128xbf16>
    %cst_20 = arith.constant dense<0.000000e+00> : vector<12x128xf32>
    %27 = tpu.matmul %25, %26, %cst_20 {dimension_numbers = #tpu.dot_dimension_numbers<[1], [0], [0], [1], [0, 0, 1, 1], [], []>} : vector<12x64xbf16>, vector<64x128xbf16>, vector<12x128xf32> -> vector<12x128xf32>
    %c0_21 = arith.constant 0 : index
    %c0_22 = arith.constant 0 : index
    %28 = vector.load %arg9[%c0_21, %c0_22] : memref<12x1xf32, #tpu.memory_space<vmem>>, vector<12x1xf32>
    %29 = vector.broadcast %28 : vector<12x1xf32> to vector<12x128xf32>
    %30 = arith.addf %27, %29 : vector<12x128xf32>
    %c0_23 = arith.constant 0 : index
    %c0_24 = arith.constant 0 : index
    %31 = vector.load %arg10[%c0_23, %c0_24] : memref<12x128xf32, #tpu.memory_space<vmem>>, vector<12x128xf32>
    tpu.vector_store %arg10[%c0_23, %c0_24], %30 {strides = array<i32>} : memref<12x128xf32, #tpu.memory_space<vmem>>, vector<12x128xf32>,
    return
  }
  func.func @transform_0(%arg0: i32) -> (i32, i32) {
    %c0_i32 = arith.constant 0 : i32
    %c0_i32_0 = arith.constant 0 : i32
    return %c0_i32, %arg0 : i32, i32
  }
  func.func @transform_1(%arg0: i32) -> (i32, i32) {
    %c0_i32 = arith.constant 0 : i32
    %c0_i32_0 = arith.constant 0 : i32
    %c0_i32_1 = arith.constant 0 : i32
    return %c0_i32, %c0_i32_0 : i32, i32
  }
  func.func @transform_2(%arg0: i32) -> (i32, i32) {
    %c0_i32 = arith.constant 0 : i32
    %c0_i32_0 = arith.constant 0 : i32
    %c0_i32_1 = arith.constant 0 : i32
    return %c0_i32, %c0_i32_0 : i32, i32
  }
  func.func @transform_3(%arg0: i32) -> (i32, i32) {
    %c0_i32 = arith.constant 0 : i32
    %c0_i32_0 = arith.constant 0 : i32
    %c0_i32_1 = arith.constant 0 : i32
    return %c0_i32, %c0_i32_0 : i32, i32
  }
  func.func @transform_4(%arg0: i32) -> (i32, i32) {
    %c0_i32 = arith.constant 0 : i32
    %c0_i32_0 = arith.constant 0 : i32
    %c0_i32_1 = arith.constant 0 : i32
    return %c0_i32, %c0_i32_0 : i32, i32
  }
  func.func @transform_5(%arg0: i32) -> (i32, i32) {
    %c0_i32 = arith.constant 0 : i32
    %c0_i32_0 = arith.constant 0 : i32
    %c0_i32_1 = arith.constant 0 : i32
    return %c0_i32, %c0_i32_0 : i32, i32
  }
  func.func @transform_6(%arg0: i32) -> (i32, i32) {
    %c0_i32 = arith.constant 0 : i32
    %c0_i32_0 = arith.constant 0 : i32
    %c0_i32_1 = arith.constant 0 : i32
    return %c0_i32, %c0_i32_0 : i32, i32
  }
  func.func @transform_7(%arg0: i32) -> (i32, i32) {
    %c0_i32 = arith.constant 0 : i32
    %c0_i32_0 = arith.constant 0 : i32
    %c0_i32_1 = arith.constant 0 : i32
    return %c0_i32, %c0_i32_0 : i32, i32
  }
  func.func @transform_8(%arg0: i32) -> (i32, i32) {
    %c0_i32 = arith.constant 0 : i32
    %c0_i32_0 = arith.constant 0 : i32
    %c0_i32_1 = arith.constant 0 : i32
    return %c0_i32, %c0_i32_0 : i32, i32
  }
  func.func @transform_9(%arg0: i32) -> (i32, i32) {
    %c0_i32 = arith.constant 0 : i32
    %c0_i32_0 = arith.constant 0 : i32
    return %c0_i32, %arg0 : i32, i32
  }
}

</mosaic_0001>

<bundles_post_ra>
// kernel: tpu_custom_call.1
= control target key start
LH: loop header
LB: loop body
LE: loop exit
PB: predicated region body
PF: predicated region fallthrough
CT: control target
= control target key end

     0   :  { %vm125_vm0 = vcmask 1041408   ;;  %vm112_vm1 = vcmask 31744   ;;  %v770_v8 = vmov 0   ;;  %s971_s0 = inlined_call_operand.vmem [shape: f32[4,128], index: 0, kind: input, shape index: {}]   ;;  %s972_s1 = inlined_call_operand.vmem [shape: bf16[64,4], index: 1, kind: input, shape index: {}]   ;;  %s973_s2 = inlined_call_operand.vmem [shape: f32[64,1], index: 2, kind: input, shape index: {}]   ;;  %s974_s3 = inlined_call_operand.vmem [shape: bf16[64,64], index: 3, kind: input, shape index: {}]   ;;  %s975_s4 = inlined_call_operand.vmem [shape: f32[64,1], index: 4, kind: input, shape index: {}]   ;;  %s976_s5 = inlined_call_operand.vmem [shape: bf16[64,64], index: 5, kind: input, shape index: {}]   ;;  %s977_s6 = inlined_call_operand.vmem [shape: f32[64,1], index: 6, kind: input, shape index: {}]   ;;  %s978_s7 = inlined_call_operand.vmem [shape: bf16[12,64], index: 7, kind: input, shape index: {}]   ;;  %s979_s8 = inlined_call_operand.vmem [shape: f32[12,1], index: 8, kind: input, shape index: {}]   ;;  %s980_s9 = inlined_call_operand.hbm [shape: f32[12,128], index: 9, kind: output, shape index: {}]  }
   0x1   :  { %v34_v0 = vld [vmem:[%s971_s0] sm:$0xf]  ;;  %v734_v4 = vld [vmem:[%s972_s1 + $0x8] sm:$0xff]   ;;  %v735_v5 = vld [vmem:[%s972_s1 + $0x10] sm:$0xff]   ;;  %731 = vset.pattern.permute.xlu0 %v770_v8  ;;  %732 = vset.pattern.permute.xlu1 %v770_v8 }
   0x2   :  { %v733_v1 = vld [vmem:[%s972_s1] sm:$0xff]   ;;  %v35_v2 = vpack.c.bf16 %v34_v0, %v34_v0  ;;  %v46_v7 = vld [vmem:[%s973_s2 + $0x10] sm:$0xff]  ;;  %v45_v9 = vld [vmem:[%s973_s2 + $0x8] sm:$0xff] }
   0x3   :  { %672 = vmatprep.mubr.msk.bf16.mxu0 %vm112_vm1, %v733_v1  ;;  %v44_v6 = vld [vmem:[%s973_s2] sm:$0xff]  ;;  %64 = vperm.xlu1 %732, %v46_v7   ;;  %v47_v10 = vld [vmem:[%s973_s2 + $0x18] sm:$0xff]  ;;  %v49_v13 = vld [vmem:[%s973_s2 + $0x28] sm:$0xff] }
   0x4   :  { %724 = vmatprep.subr.msk.bf16.mxu0 %vm125_vm0, %v35_v2  ;;  %v127_v3 = vsel %vm125_vm0, %v35_v2, 0  ;;  %54 = vperm.xlu0 %731, %v44_v6   ;;  %v736_v11 = vld [vmem:[%s972_s1 + $0x18] sm:$0xff]   ;;  %v48_v12 = vld [vmem:[%s973_s2 + $0x20] sm:$0xff]  ;;  %v50_v14 = vld [vmem:[%s973_s2 + $0x30] sm:$0xff] }
   0x5   :  { %671 = vmatpush3.bf16.msra.mxu0 %v127_v3  ;;  %v51_v15 = vld [vmem:[%s973_s2 + $0x38] sm:$0xff]  ;;  %v214_v16 = vld [vmem:[%s975_s4] sm:$0xff]  ;;  %v215_v17 = vld [vmem:[%s975_s4 + $0x8] sm:$0xff] }
   0x7   :  { %69 = vperm.xlu1 %732, %v47_v10  }
   0x8   :  { %673 = vmatmul.mubr.msk.bf16.vlgmr.msra.gmra.mrb[0].mxu0 %vm112_vm1, %v734_v4  ;;  %59 = vperm.xlu0 %731, %v45_v9  }
   0x9   :  { %676 = vmatprep.mubr.msk.bf16.mxu0 %vm112_vm1, %v735_v5 }
   0xb   :  { %79 = vperm.xlu1 %732, %v49_v13  }
   0xc   :  { %74 = vperm.xlu0 %731, %v48_v12  }
   0xf   :  { %89 = vperm.xlu1 %732, %v51_v15  }
  0x10   :  { %677 = vmatmul.mubr.msk.bf16.gmra.mrb[4].mxu0 %vm112_vm1, %v736_v11  ;;  %84 = vperm.xlu0 %731, %v50_v14  }
  0x11   :  { %14 = vsyncpa [#allocation3], 0  ;;  %v216_v18 = vld [vmem:[%s975_s4 + $0x10] sm:$0xff]  ;;  %v217_v19 = vld [vmem:[%s975_s4 + $0x18] sm:$0xff]  ;;  %vm282_vm2 = vcmask 523264   ;;  %vm772_vm3 = vmmov 0  }
  0x12   :  { %v218_v20 = vld [vmem:[%s975_s4 + $0x20] sm:$0xff]  ;;  %v219_v21 = vld [vmem:[%s975_s4 + $0x28] sm:$0xff]  ;;  %v220_v22 = vld [vmem:[%s975_s4 + $0x30] sm:$0xff]  ;;  %s773_s1 = smov [#allocation2]  }
  0x13   :  { %229 = vperm.xlu1 %732, %v215_v17   ;;  %v221_v23 = vld [vmem:[%s975_s4 + $0x38] sm:$0xff]  ;;  %v380_v24 = vld [vmem:[%s977_s6] sm:$0xff]  ;;  %v381_v25 = vld [vmem:[%s977_s6 + $0x8] sm:$0xff]  ;;  %s607_s13 = sshll.u32 %s773_s1, 4  ;;  %s608_s13 = int_to_ptr.vmem [resolvable:$true] %s607_s13 }
  0x14   :  { %224 = vperm.xlu0 %731, %v214_v16   ;;  %v382_v26 = vld [vmem:[%s977_s6 + $0x10] sm:$0xff]  ;;  %v383_v27 = vld [vmem:[%s977_s6 + $0x18] sm:$0xff]  ;;  %v384_v28 = vld [vmem:[%s977_s6 + $0x20] sm:$0xff]  ;;  %s746_s14 = scalar_lea.vmem %s608_s13, 256  ;;  %p751_p1 = scmp.lt.s32.totalorder %s608_s13, %s608_s13 }
  0x15   :  { %v385_v29 = vld [vmem:[%s977_s6 + $0x28] sm:$0xff]  ;;  %v386_v30 = vld [vmem:[%s977_s6 + $0x30] sm:$0xff]  ;;  %v387_v31 = vld [vmem:[%s977_s6 + $0x38] sm:$0xff]  ;;  %p747_p0 = scmp.ne.s32.totalorder %s608_s13, %s746_s14  ;;  %p752_p2 = scmp.lt.s32.totalorder %s746_s14, %s746_s14 }
  0x16   :  { %v539_v32 = vld [vmem:[%s979_s8] sm:$0xff]  ;;  %v540_v33 = vld [vmem:[%s979_s8 + $0x8] sm:$0xf]  ;;  %v739_v8 = vld [vmem:[%s974_s3 + $0x10] sm:$0xff]  }
  0x17   :  { %239 = vperm.xlu1 %732, %v217_v19   ;;  %v737_v34 = vld [vmem:[%s974_s3] sm:$0xff]   ;;  %v738_v7 = vld [vmem:[%s974_s3 + $0x8] sm:$0xff]   ;;  %v740_v9 = vld [vmem:[%s974_s3 + $0x18] sm:$0xff]   ;;  %p753_p3 = por %p752_p2, %p751_p1 }
  0x18   :  { %234 = vperm.xlu0 %731, %v216_v18   ;;  %688 = vmatprep.mubr.msk.bf16.mxu1 %vm282_vm2, %v737_v34  ;;  %v741_v10 = vld [vmem:[%s976_s5] sm:$0xff]  }
  0x19   :  { %704 = vmatprep.mubr.msk.bf16.mxu0 %vm282_vm2, %v741_v10  ;;  %p754_p4 = pnand %p753_p3, %p747_p0 }
  0x1b   :  { %249 = vperm.xlu1 %732, %v219_v21  }
  0x1c   :  { %244 = vperm.xlu0 %731, %v218_v20  }
  0x1f   :  { %259 = vperm.xlu1 %732, %v221_v23  }
  0x20   :  { %254 = vperm.xlu0 %731, %v220_v22  }
  0x23   :  { %395 = vperm.xlu1 %732, %v381_v25  }
  0x24   :  { %390 = vperm.xlu0 %731, %v380_v24  }
  0x27   :  { %405 = vperm.xlu1 %732, %v383_v27  }
  0x28   :  { %400 = vperm.xlu0 %731, %v382_v26  }
  0x2b   :  { %415 = vperm.xlu1 %732, %v385_v29  }
  0x2c   :  { %410 = vperm.xlu0 %731, %v384_v28  }
  0x2f   :  { %425 = vperm.xlu1 %732, %v387_v31  }
  0x30   :  { %420 = vperm.xlu0 %731, %v386_v30  }
  0x33   :  { %548 = vperm.xlu1 %732, %v540_v33  }
  0x34   :  { %543 = vperm.xlu0 %731, %v539_v32  }
  0x82   :  { %v65_v36 = vpop.permute.xlu1 %64 }
  0x83   :  { %v55_v35 = vpop.permute.xlu0 %54 }
  0x86   :  { %v70_v38 = vpop.permute.xlu1 %69 }
  0x87   :  { %v60_v37 = vpop.permute.xlu0 %59 }
  0x8a   :  { %v80_v47 = vpop.permute.xlu1 %79 }
  0x8b   :  { %v75_v42 = vpop.permute.xlu0 %74 }
  0x8e   :  { %v90_v59 = vpop.permute.xlu1 %89 }
  0x8f   :  { %v85_v54 = vpop.permute.xlu0 %84 }
  0x92   :  { %v230_v12 = vpop.permute.xlu1 %229 }
  0x93   :  { %v225_v11 = vpop.permute.xlu0 %224 }
  0x96   :  { %v240_v14 = vpop.permute.xlu1 %239 }
  0x97   :  { %v235_v13 = vpop.permute.xlu0 %234 }
  0x9a   :  { %v250_v23 = vpop.permute.xlu1 %249 }
  0x9b   :  { %v245_v18 = vpop.permute.xlu0 %244 }
  0x9f   :  { %v255_v30 = vpop.permute.xlu0 %254 }
  0xdb   :  { %v674_v39 = vpop.f32.mrb[0].mxu0 }
  0xdc   :  { %v172_v40 = vadd.f32 %v674_v39, %v65_v36  ;;  %v163_v41 = vpop.f32.mrb[1].mxu0 }
  0xdd   :  { %v164_v43 = vadd.f32 %v163_v41, %v55_v35  ;;  %v675_v44 = vpop.f32.mrb[2].mxu0  ;;  %v260_v35 = vpop.permute.xlu1 %259 }
  0xde   :  { %v175_v45 = vadd.f32 %v675_v44, %v70_v38  ;;  %v166_v46 = vpop.f32.mrb[3].mxu0  ;;  %v196_v49 = vmax.f32 %v172_v40, 0.0 }
  0xdf   :  { %v167_v48 = vadd.f32 %v166_v46, %v60_v37  ;;  %v194_v51 = vmax.f32 %v164_v43, 0.0 }
  0xe0   :  { %v197_v50 = vmax.f32 %v175_v45, 0.0 }
  0xe1   :  { %v195_v52 = vmax.f32 %v167_v48, 0.0  ;;  %v743_v48 = vld [vmem:[%s976_s5 + $0x10] sm:$0xff]  }
  0xe2   :  { %v211_v53 = vpack.c.bf16 %v197_v50, %v196_v49  ;;  %v744_v49 = vld [vmem:[%s976_s5 + $0x18] sm:$0xff]   ;;  %v771_v50 = vmov 0.0  }
  0xe3   :  { %v678_v55 = vpop.f32.mrb[4].mxu0  ;;  %v210_v56 = vpack.c.bf16 %v195_v52, %v194_v51  ;;  %v391_v51 = vpop.permute.xlu0 %390 }
  0xe4   :  { %v188_v57 = vadd.f32 %v678_v55, %v85_v54  ;;  %v179_v58 = vpop.f32.mrb[5].mxu0  ;;  %v396_v52 = vpop.permute.xlu1 %395 }
  0xe5   :  { %v180_v60 = vadd.f32 %v179_v58, %v75_v42  ;;  %v679_v61 = vpop.f32.mrb[6].mxu0  ;;  %680 = vmatprep.subr.bf16.mxu1 %v210_v56 }
  0xe6   :  { %v191_v62 = vadd.f32 %v679_v61, %v90_v59  ;;  %v182_v63 = vpop.f32.mrb[7].mxu0  ;;  %681 = vmatpush3.bf16.msra.mxu1 %v210_v56  ;;  %v200_v1 = vmax.f32 %v188_v57, 0.0 }
  0xe7   :  { %v183_v0 = vadd.f32 %v182_v63, %v80_v47  ;;  %682 = vmatprep.subr.bf16.mxu1 %v211_v53  ;;  %v198_v3 = vmax.f32 %v180_v60, 0.0  ;;  %v742_v47 = vld [vmem:[%s976_s5 + $0x8] sm:$0xff]  }
  0xe8   :  { %v201_v2 = vmax.f32 %v191_v62, 0.0  ;;  %v406_v54 = vpop.permute.xlu1 %405 }
  0xe9   :  { %v199_v4 = vmax.f32 %v183_v0, 0.0 }
  0xea   :  { %v213_v5 = vpack.c.bf16 %v201_v2, %v200_v1  ;;  %683 = vmatpush3.bf16.msra.mxu1 %v211_v53  ;;  %v401_v53 = vpop.permute.xlu0 %400 }
  0xeb   :  { %v212_v6 = vpack.c.bf16 %v199_v4, %v198_v3 }
  0xec   :  { %v416_v63 = vpop.permute.xlu1 %415 }
  0xed   :  { %684 = vmatprep.subr.bf16.mxu1 %v212_v6 }
  0xee   :  { %685 = vmatpush3.bf16.msra.mxu1 %v212_v6  ;;  %v411_v58 = vpop.permute.xlu0 %410 }
  0xef   :  { %686 = vmatprep.subr.bf16.mxu1 %v213_v5 }
  0xf2   :  { %687 = vmatpush3.bf16.msra.mxu1 %v213_v5  ;;  %v421_v6 = vpop.permute.xlu0 %420 }
  0xf3   :  { %712 = vmatprep.subr.bf16.mxu1 %v771_v50 }
  0xf5   :  { %689 = vmatmul.mubr.msk.bf16.vlgmr.msra.gmra.mrb[0].mxu1 %vm282_vm2, %v738_v7 }
  0xf6   :  { %692 = vmatprep.mubr.msk.bf16.mxu1 %vm282_vm2, %v739_v8 }
  0xfd   :  { %693 = vmatmul.mubr.msk.bf16.gmra.mrb[4].mxu1 %vm282_vm2, %v740_v9 }
  0xfe   :  { %720 = vmatprep.mubr.msk.bf16.mxu1 %vm772_vm3, %v771_v50 }
 0x1c8   :  { %v690_v15 = vpop.f32.mrb[0].mxu1 }
 0x1c9   :  { %v338_v16 = vadd.f32 %v690_v15, %v235_v13  ;;  %v329_v17 = vpop.f32.mrb[1].mxu1 }
 0x1ca   :  { %v330_v19 = vadd.f32 %v329_v17, %v225_v11  ;;  %v691_v20 = vpop.f32.mrb[2].mxu1  ;;  %v426_v11 = vpop.permute.xlu1 %425 }
 0x1cb   :  { %v341_v21 = vadd.f32 %v691_v20, %v240_v14  ;;  %v332_v22 = vpop.f32.mrb[3].mxu1  ;;  %v362_v25 = vmax.f32 %v338_v16, 0.0 }
 0x1cc   :  { %v333_v24 = vadd.f32 %v332_v22, %v230_v12  ;;  %v360_v27 = vmax.f32 %v330_v19, 0.0 }
 0x1cd   :  { %v363_v26 = vmax.f32 %v341_v21, 0.0 }
 0x1ce   :  { %v361_v28 = vmax.f32 %v333_v24, 0.0  ;;  %v544_v24 = vpop.permute.xlu0 %543 }
 0x1cf   :  { %v377_v29 = vpack.c.bf16 %v363_v26, %v362_v25 }
 0x1d0   :  { %v376_v31 = vpack.c.bf16 %v361_v28, %v360_v27  ;;  %v694_v32 = vpop.f32.mrb[4].mxu1  ;;  %v549_v28 = vpop.permute.xlu1 %548 }
 0x1d1   :  { %v354_v33 = vadd.f32 %v694_v32, %v255_v30  ;;  %v345_v34 = vpop.f32.mrb[5].mxu1 }
 0x1d2   :  { %v346_v36 = vadd.f32 %v345_v34, %v245_v18  ;;  %v695_v37 = vpop.f32.mrb[6].mxu1  ;;  %696 = vmatprep.subr.bf16.mxu0 %v376_v31 }
 0x1d3   :  { %v357_v38 = vadd.f32 %v695_v37, %v260_v35  ;;  %v348_v39 = vpop.f32.mrb[7].mxu1  ;;  %697 = vmatpush3.bf16.msra.mxu0 %v376_v31  ;;  %v366_v41 = vmax.f32 %v354_v33, 0.0 }
 0x1d4   :  { %v349_v40 = vadd.f32 %v348_v39, %v250_v23  ;;  %698 = vmatprep.subr.bf16.mxu0 %v377_v29  ;;  %v364_v43 = vmax.f32 %v346_v36, 0.0  ;;  %v745_v23 = vld [vmem:[%s978_s7] sm:$0x3f]  }
 0x1d5   :  { %v367_v42 = vmax.f32 %v357_v38, 0.0 }
 0x1d6   :  { %v365_v44 = vmax.f32 %v349_v40, 0.0 }
 0x1d7   :  { %v379_v45 = vpack.c.bf16 %v367_v42, %v366_v41  ;;  %699 = vmatpush3.bf16.msra.mxu0 %v377_v29 }
 0x1d8   :  { %v378_v46 = vpack.c.bf16 %v365_v44, %v364_v43 }
 0x1da   :  { %700 = vmatprep.subr.bf16.mxu0 %v378_v46 }
 0x1db   :  { %701 = vmatpush3.bf16.msra.mxu0 %v378_v46 }
 0x1dc   :  { %702 = vmatprep.subr.bf16.mxu0 %v379_v45 }
 0x1df   :  { %703 = vmatpush3.bf16.msra.mxu0 %v379_v45 }
 0x1e2   :  { %705 = vmatmul.mubr.msk.bf16.vlgmr.msra.gmra.mrb[8].mxu0 %vm282_vm2, %v742_v47 }
 0x1e3   :  { %708 = vmatprep.mubr.msk.bf16.mxu0 %vm282_vm2, %v743_v48 }
 0x1ea   :  { %709 = vmatmul.mubr.msk.bf16.gmra.mrb[12].mxu0 %vm282_vm2, %v744_v49 }
 0x2b5   :  { %v706_v55 = vpop.f32.mrb[8].mxu0 }
 0x2b6   :  { %v503_v56 = vadd.f32 %v706_v55, %v401_v53  ;;  %v494_v57 = vpop.f32.mrb[9].mxu0 }
 0x2b7   :  { %v495_v59 = vadd.f32 %v494_v57, %v391_v51  ;;  %v707_v60 = vpop.f32.mrb[10].mxu0 }
 0x2b8   :  { %v506_v61 = vadd.f32 %v707_v60, %v406_v54  ;;  %v497_v62 = vpop.f32.mrb[11].mxu0  ;;  %v527_v1 = vmax.f32 %v503_v56, 0.0 }
 0x2b9   :  { %v498_v0 = vadd.f32 %v497_v62, %v396_v52  ;;  %v525_v3 = vmax.f32 %v495_v59, 0.0 }
 0x2ba   :  { %v528_v2 = vmax.f32 %v506_v61, 0.0 }
 0x2bb   :  { %v526_v4 = vmax.f32 %v498_v0, 0.0 }
 0x2bc   :  { %v536_v5 = vpack.c.bf16 %v528_v2, %v527_v1 }
 0x2bd   :  { %v535_v7 = vpack.c.bf16 %v526_v4, %v525_v3  ;;  %v710_v8 = vpop.f32.mrb[12].mxu0 }
 0x2be   :  { %v519_v9 = vadd.f32 %v710_v8, %v421_v6  ;;  %v510_v10 = vpop.f32.mrb[13].mxu0 }
 0x2bf   :  { %v511_v12 = vadd.f32 %v510_v10, %v411_v58  ;;  %v711_v13 = vpop.f32.mrb[14].mxu0  ;;  %713 = vmatpush3.bf16.msra.mxu1 %v535_v7 }
 0x2c0   :  { %v522_v14 = vadd.f32 %v711_v13, %v426_v11  ;;  %v513_v15 = vpop.f32.mrb[15].mxu0  ;;  %714 = vmatprep.subr.bf16.mxu1 %v771_v50  ;;  %v531_v17 = vmax.f32 %v519_v9, 0.0 }
 0x2c1   :  { %v514_v16 = vadd.f32 %v513_v15, %v416_v63  ;;  %v529_v19 = vmax.f32 %v511_v12, 0.0 }
 0x2c2   :  { %v532_v18 = vmax.f32 %v522_v14, 0.0 }
 0x2c3   :  { %v530_v20 = vmax.f32 %v514_v16, 0.0  ;;  %715 = vmatpush3.bf16.msra.mxu1 %v536_v5 }
 0x2c4   :  { %v538_v21 = vpack.c.bf16 %v532_v18, %v531_v17  ;;  %716 = vmatprep.subr.bf16.mxu1 %v771_v50 }
 0x2c5   :  { %v537_v22 = vpack.c.bf16 %v530_v20, %v529_v19 }
 0x2c7   :  { %717 = vmatpush3.bf16.msra.mxu1 %v537_v22 }
 0x2c8   :  { %718 = vmatprep.subr.bf16.mxu1 %v771_v50 }
 0x2cb   :  { %719 = vmatpush3.bf16.msra.mxu1 %v538_v21 }
 0x2ce   :  { %721 = vmatmul.mubr.msk.bf16.vlgmr.msra.gmra.mrb[8].mxu1 %vm282_vm2, %v745_v23 }
 0x3a1   :  { %v593_v25 = vpop.f32.mrb[8].mxu1 }
 0x3a2   :  { %v594_v26 = vadd.f32 %v593_v25, %v544_v24  ;;  %v722_v27 = vpop.f32.mrb[9].mxu1 }
 0x3a3   :  { %v596_v29 = vpop.f32.mrb[10].mxu1 }
 0x3a4   :  { %600 = vst [vmem:[#allocation2] sm:$0xff] %v594_v26  ;;  %v597_v30 = vadd.f32 %v596_v29, %v549_v28  ;;  %v723_v31 = vpop.f32.mrb[11].mxu1 }
 0x3a6   :  { %601 = vst [vmem:[#allocation2 + $0x8] sm:$0xf] %v597_v30 }
 0x3a7   :  { %757 = shalt.err (!%p754_p4)
}
 0x3a8   :  { %s758_s16 = scalar_lea.hbm %s980_s9, 256 }
 0x3a9   :  { %p759_p5 = scmp.ne.s32.totalorder %s980_s9, %s758_s16  ;;  %p762_p6 = scmp.lt.u32.totalorder %s758_s16, %s980_s9 }
 0x3ab   :  { %p764_p7 = pnand %p762_p6, %p759_p5 }
 0x3ad   :  { %767 = shalt.err (!%p764_p7)
}
 0x3ae   :  { %s774_s19 = smov 128   ;;  %s775_s20 = smov 8  }
 0x3af   :  { %613 = dma.vmem_to_hbm [thread:$0]  %s608_s13, 256, %s980_s9, [#allocation3], %s774_s19, %s774_s19, %s775_s20  }
 0x3b0   :  { %768 = dma.done.wait [#allocation3], 256  }
 0x3b1   :  { %769 = vsyncadd [#allocation3], 4294967040 }
 0x3b2   :  { %617 = vsyncpa [#allocation3], 1 }

</bundles_post_ra>
